<compile_context>
chip_gen: v5e
topology: v5e:2x2
jax: 0.10.0
libtpu: 0.0.40
codegen_flags: <defaults>
</compile_context>

<pallas_src>
import functools

import jax
import jax.numpy as jnp
from jax.experimental import pallas as pl
from jax.experimental.pallas import tpu as pltpu


def _round_up(x, m):
    return (x + m - 1) // m * m


# ----------------------------------------------------------------------------
# Pallas kernel: in-kernel im2col conv (stride 1) + bias + SiLU.
#   w_ref    : (T, Cout_p, Cin_p) bf16   per-tap weight matrices, T = kh*kw
#   b_ref    : (Cout_p, 1)        f32    bias
#   x0_ref   : (1, Cin_p, TL)     bf16   current lane tile of flattened padded image
#   x1_ref   : (1, Cin_p, TL)     bf16   next lane tile (right-halo source)
#   o_ref    : (1, Cout_p, TL)    bf16   output lane tile (lane-dense stores)
#   xcat_ref : (Cin_p, 2*TL)      bf16   VMEM scratch holding [current | next]
# ----------------------------------------------------------------------------
def _conv_silu_kernel(w_ref, b_ref, x0_ref, x1_ref, o_ref, xcat_ref, *, shifts, tl):
    # Stage the two tiles side by side so every tap is a static window of one ref.
    xcat_ref[:, :tl] = x0_ref[0]
    xcat_ref[:, tl:] = x1_ref[0]

    acc = None
    for t, sh in enumerate(shifts):                 # static, unrolled kh*kw taps
        xs = xcat_ref[:, sh:sh + tl]                # (Cin_p, TL) shifted window
        d = jax.lax.dot_general(
            w_ref[t], xs,
            dimension_numbers=(((1,), (0,)), ((), ())),
            preferred_element_type=jnp.float32)     # (Cout_p, TL) f32 on MXU
        acc = d if acc is None else acc + d

    z = acc + b_ref[...]                            # bias broadcast along lanes
    sig = pl.reciprocal(1.0 + jnp.exp(-z), approx=True)   # exp + rcp -> EUP slot
    o_ref[0] = (z * sig).astype(o_ref.dtype)        # bf16 store


def _pick_lane_tile(cin_p, cout_p, shift_max, l_img):
    """Largest 128-multiple lane tile that fits a conservative VMEM budget."""
    budget = 24 * 1024 * 1024                       # safe for v7x's 64 MiB physical
    tl_min = _round_up(max(shift_max, 1), 128)      # two-tile halo needs TL >= shift_max
    tl = tl_min
    for cand in (2048, 1024, 512, 256, 128):
        if cand < tl_min:
            continue
        blocks = 2 * 2 * cin_p * cand * 2           # two input tiles, double-buffered, bf16
        blocks += 2 * cout_p * cand * 2             # output tile, double-buffered, bf16
        temps = 2 * cin_p * cand * 2                # xcat scratch
        temps += 2 * cout_p * cand * 4              # f32 accumulator + epilogue temps
        temps += cin_p * cand * 2                   # tap slice
        if blocks + temps <= budget:
            tl = cand
            break
    # Don't over-pad tiny problems past a single tile.
    tl = max(tl_min, min(tl, _round_up(l_img, 128)))
    return tl


def fused_conv_silu(x, w, b, stride, padding):
    """SiLU(conv2d(x, w, bias=b, stride=1, padding)) as one Pallas launch."""
    n, cin, h, wd = x.shape
    cout, _, kh, kw = w.shape
    assert stride == 1  # TODO(synk): stride>1 not supported by the fast path
    hp, wp = h + 2 * padding, wd + 2 * padding
    ho, wo = hp - kh + 1, wp - kw + 1
    t = kh * kw

    cin_p = _round_up(cin, 8)
    cout_p = _round_up(cout, 16)
    l_img = hp * wp
    shift_max = (kh - 1) * wp + (kw - 1)

    tl = _pick_lane_tile(cin_p, cout_p, shift_max, l_img)
    assert tl % 128 == 0 and tl >= shift_max
    l_out = _round_up(l_img, tl)                    # per-image output lane length
    l_in = l_out + tl                               # +1 tile so block (q+1) is in range
    n_tiles = l_out // tl
    shifts = tuple(i * wp + j for i in range(kh) for j in range(kw))

    # Host prep (single cheap passes): zero-pad H/W, flatten spatial to the lane
    # axis, pad channels/lanes with zeros, cast to bf16.  No transposes.
    xp = jnp.pad(x, ((0, 0), (0, 0), (padding, padding), (padding, padding)))
    xf = xp.reshape(n, cin, l_img)
    xf = jnp.pad(xf, ((0, 0), (0, cin_p - cin), (0, l_in - l_img))).astype(jnp.bfloat16)

    # Per-tap weight matrices (T, Cout_p, Cin_p); zero padding keeps the math exact.
    wt = jnp.transpose(w, (2, 3, 0, 1)).reshape(t, cout, cin)
    wt = jnp.pad(wt, ((0, 0), (0, cout_p - cout), (0, cin_p - cin))).astype(jnp.bfloat16)
    b2 = jnp.pad(b.reshape(cout, 1), ((0, cout_p - cout), (0, 0))).astype(jnp.float32)

    # VMEM working-set estimate -> compiler limit (>=32 MiB, capped under v7x physical).
    est = (2 * t * cout_p * cin_p * 2 + 2 * cout_p * 4          # weight + bias (dbl-buf)
           + 2 * 2 * cin_p * tl * 2 + 2 * cout_p * tl * 2       # input/output blocks
           + 2 * cin_p * tl * 2 + 2 * cout_p * tl * 4           # xcat scratch + f32 temps
           + cin_p * tl * 2)
    vmem_limit = int(min(60 * 2 ** 20, max(32 * 2 ** 20, 2 * est)))

    kernel = functools.partial(_conv_silu_kernel, shifts=shifts, tl=tl)
    out = pl.pallas_call(
        kernel,
        out_shape=jax.ShapeDtypeStruct((n, cout_p, l_out), jnp.bfloat16),
        grid=(n, n_tiles),
        in_specs=[
            pl.BlockSpec((t, cout_p, cin_p), lambda ni, qi: (0, 0, 0)),
            pl.BlockSpec((cout_p, 1), lambda ni, qi: (0, 0)),
            pl.BlockSpec((1, cin_p, tl), lambda ni, qi: (ni, 0, qi)),
            pl.BlockSpec((1, cin_p, tl), lambda ni, qi: (ni, 0, qi + 1)),
        ],
        out_specs=pl.BlockSpec((1, cout_p, tl), lambda ni, qi: (ni, 0, qi)),
        scratch_shapes=[pltpu.VMEM((cin_p, 2 * tl), jnp.bfloat16)],
        compiler_params=pltpu.CompilerParams(
            dimension_semantics=("parallel", "parallel"),
            vmem_limit_bytes=vmem_limit),
    )(wt, b2, xf, xf)

    y = out[:, :cout, :l_img].reshape(n, cout, hp, wp)[:, :, :ho, :wo]
    return y.astype(jnp.float32)


# ----------------------------------------------------------------------------
# Host-side reparameterization (eval-mode BN) -- transI..transVI in JAX.
# ----------------------------------------------------------------------------
def _fuse_bn(kernel, bn):
    t = bn['gamma'] / jnp.sqrt(bn['var'] + bn['eps'])
    return kernel * t.reshape(-1, 1, 1, 1), bn['beta'] - bn['mean'] * t


def _pad_1x1_to_kxk(k1, k):
    p = k // 2
    return jnp.pad(k1, ((0, 0), (0, 0), (p, p), (p, p)))


def _merge_1x1_then_kxk(k1, b1, k2, b2):
    """transIII_1x1_kxk for groups=1: (1x1 conv + bias b1) followed by kxk conv."""
    k = jnp.einsum('omhw,mi->oihw', k2, k1[:, :, 0, 0],
                   precision=jax.lax.Precision.HIGHEST)
    b_hat = jnp.sum(k2 * b1.reshape(1, -1, 1, 1), axis=(1, 2, 3))
    return k, b_hat + b2


def _avg_kernel(c, k):
    """transV_avg for groups=1: diagonal 1/k^2 kernel."""
    return (jnp.eye(c, dtype=jnp.float32) / (k * k))[:, :, None, None] \
        * jnp.ones((1, 1, k, k), jnp.float32)


def _fuse_branch_set(p, in_c, out_c, k):
    """Equivalent kxk kernel/bias of dbb_1x1 + dbb_avg + dbb_1x1_kxk (groups=1)."""
    # dbb_1x1: conv1x1 + BN  -> kxk kernel with the 1x1 at the center
    k1, b1 = _fuse_bn(p['one']['conv_w'], p['one']['bn'])
    k1 = _pad_1x1_to_kxk(k1, k)
    # dbb_1x1_kxk: (IdentityBasedConv1x1 + BNAndPad) o (conv kxk + BN)
    kid = p['kxk']['idconv_w'] + jnp.eye(in_c, dtype=jnp.float32).reshape(in_c, in_c, 1, 1)
    ka1, ba1 = _fuse_bn(kid, p['kxk']['bn1'])
    ka2, ba2 = _fuse_bn(p['kxk']['conv2_w'], p['kxk']['bn2'])
    kk, bk = _merge_1x1_then_kxk(ka1, ba1, ka2, ba2)
    # dbb_avg: (conv1x1 + BNAndPad) o (AvgPool + BN)
    kv2, bv2 = _fuse_bn(_avg_kernel(out_c, k), p['avg']['avgbn'])
    kv1, bv1 = _fuse_bn(p['avg']['conv_w'], p['avg']['bn'])
    kv, bv = _merge_1x1_then_kxk(kv1, bv1, kv2, bv2)
    return (k1 + kk + kv), (b1 + bk + bv)


def reparam_deep_dbb(params, in_c, out_c, k):
    """Collapse the whole DeepDiverseBranchBlock into one (kxk kernel, bias)."""
    inner = params['dbbno']
    k_or, b_or = _fuse_bn(inner['origin_w'], inner['origin_bn'])
    k_in, b_in = _fuse_branch_set(inner, in_c, out_c, k)     # inner DBB-NOAct branches
    k_out, b_out = _fuse_branch_set(params, in_c, out_c, k)  # outer branches
    return k_or + k_in + k_out, b_or + b_in + b_out


def deep_dbb_forward(x, params, k, stride, padding):
    in_c = x.shape[1]
    out_c = params['dbbno']['origin_w'].shape[0]
    wk, bk = reparam_deep_dbb(params, in_c, out_c, k)
    return fused_conv_silu(x, wk, bk, stride, padding)


# ----------------------------------------------------------------------------
# Pure-JAX branch-by-branch reference (eval-mode BN) for numerical validation.
# ----------------------------------------------------------------------------
def _conv_ref(x, w, stride=1, padding=0):
    return jax.lax.conv_general_dilated(
        x, w, window_strides=(stride, stride),
        padding=[(padding, padding), (padding, padding)],
        dimension_numbers=('NCHW', 'OIHW', 'NCHW'),
        precision=jax.lax.Precision.HIGHEST)


def _bn_ref(y, bn):
    t = bn['gamma'] / jnp.sqrt(bn['var'] + bn['eps'])
    return y * t.reshape(1, -1, 1, 1) + (bn['beta'] - bn['mean'] * t).reshape(1, -1, 1, 1)


def _bn_pad_ref(y, bn, p):
    out = _bn_ref(y, bn)
    if p <= 0:
        return out
    t = bn['gamma'] / jnp.sqrt(bn['var'] + bn['eps'])
    pv = (bn['beta'] - bn['mean'] * t).reshape(1, -1, 1, 1)
    out = jnp.pad(out, ((0, 0), (0, 0), (p, p), (p, p)))
    n, c, hh, ww = out.shape
    out = out.at[:, :, :p, :].set(jnp.broadcast_to(pv, (n, c, p, ww)))
    out = out.at[:, :, hh - p:, :].set(jnp.broadcast_to(pv, (n, c, p, ww)))
    out = out.at[:, :, :, :p].set(jnp.broadcast_to(pv, (n, c, hh, p)))
    out = out.at[:, :, :, ww - p:].set(jnp.broadcast_to(pv, (n, c, hh, p)))
    return out


def _avgpool_ref(x, k, stride):
    s = jax.lax.reduce_window(x, 0.0, jax.lax.add,
                              (1, 1, k, k), (1, 1, stride, stride), 'VALID')
    return s / (k * k)


def _branch_set_ref(x, p, in_c, k, stride, padding):
    o = _bn_ref(_conv_ref(x, p['one']['conv_w'], stride, 0), p['one']['bn'])
    y = _conv_ref(x, p['avg']['conv_w'], 1, 0)
    y = _bn_pad_ref(y, p['avg']['bn'], padding)
    o = o + _bn_ref(_avgpool_ref(y, k, stride), p['avg']['avgbn'])
    kid = p['kxk']['idconv_w'] + jnp.eye(in_c, dtype=jnp.float32).reshape(in_c, in_c, 1, 1)
    z = _conv_ref(x, kid, 1, 0)
    z = _bn_pad_ref(z, p['kxk']['bn1'], padding)
    o = o + _bn_ref(_conv_ref(z, p['kxk']['conv2_w'], stride, 0), p['kxk']['bn2'])
    return o


def deep_dbb_reference(x, params, k, stride, padding):
    in_c = x.shape[1]
    inner = params['dbbno']
    o = _bn_ref(_conv_ref(x, inner['origin_w'], stride, padding), inner['origin_bn'])
    o = o + _branch_set_ref(x, inner, in_c, k, stride, padding)
    o = o + _branch_set_ref(x, params, in_c, k, stride, padding)
    return o * jax.nn.sigmoid(o)


# ----------------------------------------------------------------------------
# Deterministic parameter initialization
# ----------------------------------------------------------------------------
def _make_bn(key, c):
    k1, k2, k3, k4 = jax.random.split(key, 4)
    return dict(
        gamma=jax.random.uniform(k1, (c,), jnp.float32, 0.5, 1.5),
        beta=0.1 * jax.random.normal(k2, (c,), jnp.float32),
        mean=0.1 * jax.random.normal(k3, (c,), jnp.float32),
        var=jax.random.uniform(k4, (c,), jnp.float32, 0.5, 1.5),
        eps=1e-5,
    )


def _make_branch_set(key, in_c, out_c, k):
    ks = jax.random.split(key, 8)
    avg = dict(conv_w=0.1 * jax.random.normal(ks[0], (out_c, in_c, 1, 1), jnp.float32),
               bn=_make_bn(ks[1], out_c),
               avgbn=_make_bn(ks[2], out_c))
    one = dict(conv_w=0.1 * jax.random.normal(ks[3], (out_c, in_c, 1, 1), jnp.float32),
               bn=_make_bn(ks[4], out_c))
    kxk = dict(idconv_w=jnp.zeros((in_c, in_c, 1, 1), jnp.float32),  # nn.init.zeros_
               bn1=_make_bn(ks[5], in_c),
               conv2_w=0.1 * jax.random.normal(ks[6], (out_c, in_c, k, k), jnp.float32),
               bn2=_make_bn(ks[7], out_c))
    return dict(avg=avg, one=one, kxk=kxk)


def init_params(key, in_c, out_c, k):
    ks = jax.random.split(key, 4)
    inner = _make_branch_set(ks[0], in_c, out_c, k)
    inner['origin_w'] = 0.1 * jax.random.normal(ks[1], (out_c, in_c, k, k), jnp.float32)
    inner['origin_bn'] = _make_bn(ks[2], out_c)
    outer = _make_branch_set(ks[3], in_c, out_c, k)
    return dict(dbbno=inner, avg=outer['avg'], one=outer['one'], kxk=outer['kxk'])


# ----------------------------------------------------------------------------
# Main
# ----------------------------------------------------------------------------
if __name__ == "__main__":
    in_channels, out_channels = 4, 8
    kernel_size, stride, padding, groups = 3, 1, 1, 1
    assert groups == 1 and stride == 1  # only groups=1, stride=1 supported
    N, H, W = 2, 16, 16

    root = jax.random.PRNGKey(0)
    k_x, k_p = jax.random.split(root, 2)
    x = jax.random.normal(k_x, (N, in_channels, H, W), jnp.float32)
    params = init_params(k_p, in_channels, out_channels, kernel_size)

    fwd = jax.jit(functools.partial(
        deep_dbb_forward, k=kernel_size, stride=stride, padding=padding))
    y = fwd(x, params)
    jax.block_until_ready(y)
    assert y.shape == (N, out_channels, H, W), y.shape
    assert bool(jnp.all(jnp.isfinite(y)))

    # Validate against the branch-by-branch eval-mode reference (pure JAX, f32).
    y_ref = deep_dbb_reference(x, params, kernel_size, stride, padding)
    err = float(jnp.max(jnp.abs(y - y_ref)))
    scale = float(jnp.max(jnp.abs(y_ref))) + 1e-6
    assert err <= 5e-2 * scale + 1e-3, ("mismatch vs reference", err, scale)

    print("KERNEL_OK")
</pallas_src>

<mosaic_0001>
module attributes {stable_mosaic.version = 11 : i64} {
  func.func @_conv_silu_kernel(%arg0: i32, %arg1: i32, %arg2: memref<9x16x8xbf16, #tpu.memory_space<vmem>>, %arg3: memref<16x1xf32, #tpu.memory_space<vmem>>, %arg4: memref<1x8x384xbf16, #tpu.memory_space<vmem>>, %arg5: memref<1x8x384xbf16, #tpu.memory_space<vmem>>, %arg6: memref<1x16x384xbf16, #tpu.memory_space<vmem>>, %arg7: memref<8x768xbf16, #tpu.memory_space<vmem>>) attributes {dimension_semantics = [#tpu.dimension_semantics<parallel>, #tpu.dimension_semantics<parallel>], iteration_bounds = array<i64: 2, 1>, scalar_prefetch = 0 : i64, scratch_operands = 1 : i64, tpu.core_type = #tpu.core_type<tc>, window_params = [{pipeline_mode = #tpu.pipeline_mode<synchronous>, transform_indices = @transform_0, window_bounds = array<i64: 9, 16, 8>}, {pipeline_mode = #tpu.pipeline_mode<synchronous>, transform_indices = @transform_1, window_bounds = array<i64: 16, 1>}, {transform_indices = @transform_2, window_bounds = array<i64: 1, 8, 384>}, {transform_indices = @transform_3, window_bounds = array<i64: 1, 8, 384>}, {transform_indices = @transform_4, window_bounds = array<i64: 1, 16, 384>}]} {
    %c0 = arith.constant 0 : index
    %c0_0 = arith.constant 0 : index
    %c0_1 = arith.constant 0 : index
    %0 = vector.load %arg4[%c0, %c0_0, %c0_1] : memref<1x8x384xbf16, #tpu.memory_space<vmem>>, vector<1x8x384xbf16>
    %1 = vector.shape_cast %0 : vector<1x8x384xbf16> to vector<8x384xbf16>
    %c0_2 = arith.constant 0 : index
    %c0_3 = arith.constant 0 : index
    %2 = vector.load %arg7[%c0_2, %c0_3] : memref<8x768xbf16, #tpu.memory_space<vmem>>, vector<8x384xbf16>
    tpu.vector_store %arg7[%c0_2, %c0_3], %1 {strides = array<i32>} : memref<8x768xbf16, #tpu.memory_space<vmem>>, vector<8x384xbf16>,
    %c0_4 = arith.constant 0 : index
    %c0_5 = arith.constant 0 : index
    %c0_6 = arith.constant 0 : index
    %3 = vector.load %arg5[%c0_4, %c0_5, %c0_6] : memref<1x8x384xbf16, #tpu.memory_space<vmem>>, vector<1x8x384xbf16>
    %4 = vector.shape_cast %3 : vector<1x8x384xbf16> to vector<8x384xbf16>
    %c0_7 = arith.constant 0 : index
    %c384 = arith.constant 384 : index
    %5 = vector.load %arg7[%c0_7, %c384] : memref<8x768xbf16, #tpu.memory_space<vmem>>, vector<8x384xbf16>
    tpu.vector_store %arg7[%c0_7, %c384], %4 {strides = array<i32>} : memref<8x768xbf16, #tpu.memory_space<vmem>>, vector<8x384xbf16>,
    %c0_8 = arith.constant 0 : index
    %c0_9 = arith.constant 0 : index
    %6 = vector.load %arg7[%c0_8, %c0_9] : memref<8x768xbf16, #tpu.memory_space<vmem>>, vector<8x384xbf16>
    %c0_10 = arith.constant 0 : index
    %c0_11 = arith.constant 0 : index
    %c0_12 = arith.constant 0 : index
    %7 = vector.load %arg2[%c0_10, %c0_11, %c0_12] : memref<9x16x8xbf16, #tpu.memory_space<vmem>>, vector<1x16x8xbf16>
    %8 = vector.shape_cast %7 : vector<1x16x8xbf16> to vector<16x8xbf16>
    %cst = arith.constant dense<0.000000e+00> : vector<16x384xf32>
    %9 = tpu.matmul %8, %6, %cst {dimension_numbers = #tpu.dot_dimension_numbers<[1], [0], [0], [1], [0, 0, 1, 1], [], []>} : vector<16x8xbf16>, vector<8x384xbf16>, vector<16x384xf32> -> vector<16x384xf32>
    %c0_13 = arith.constant 0 : index
    %c1 = arith.constant 1 : index
    %10 = vector.load %arg7[%c0_13, %c1] : memref<8x768xbf16, #tpu.memory_space<vmem>>, vector<8x384xbf16>
    %c1_14 = arith.constant 1 : index
    %c0_15 = arith.constant 0 : index
    %c0_16 = arith.constant 0 : index
    %11 = vector.load %arg2[%c1_14, %c0_15, %c0_16] : memref<9x16x8xbf16, #tpu.memory_space<vmem>>, vector<1x16x8xbf16>
    %12 = vector.shape_cast %11 : vector<1x16x8xbf16> to vector<16x8xbf16>
    %cst_17 = arith.constant dense<0.000000e+00> : vector<16x384xf32>
    %13 = tpu.matmul %12, %10, %cst_17 {dimension_numbers = #tpu.dot_dimension_numbers<[1], [0], [0], [1], [0, 0, 1, 1], [], []>} : vector<16x8xbf16>, vector<8x384xbf16>, vector<16x384xf32> -> vector<16x384xf32>
    %14 = arith.addf %9, %13 : vector<16x384xf32>
    %c0_18 = arith.constant 0 : index
    %c2 = arith.constant 2 : index
    %15 = vector.load %arg7[%c0_18, %c2] : memref<8x768xbf16, #tpu.memory_space<vmem>>, vector<8x384xbf16>
    %c2_19 = arith.constant 2 : index
    %c0_20 = arith.constant 0 : index
    %c0_21 = arith.constant 0 : index
    %16 = vector.load %arg2[%c2_19, %c0_20, %c0_21] : memref<9x16x8xbf16, #tpu.memory_space<vmem>>, vector<1x16x8xbf16>
    %17 = vector.shape_cast %16 : vector<1x16x8xbf16> to vector<16x8xbf16>
    %cst_22 = arith.constant dense<0.000000e+00> : vector<16x384xf32>
    %18 = tpu.matmul %17, %15, %cst_22 {dimension_numbers = #tpu.dot_dimension_numbers<[1], [0], [0], [1], [0, 0, 1, 1], [], []>} : vector<16x8xbf16>, vector<8x384xbf16>, vector<16x384xf32> -> vector<16x384xf32>
    %19 = arith.addf %14, %18 : vector<16x384xf32>
    %c0_23 = arith.constant 0 : index
    %c18 = arith.constant 18 : index
    %20 = vector.load %arg7[%c0_23, %c18] : memref<8x768xbf16, #tpu.memory_space<vmem>>, vector<8x384xbf16>
    %c3 = arith.constant 3 : index
    %c0_24 = arith.constant 0 : index
    %c0_25 = arith.constant 0 : index
    %21 = vector.load %arg2[%c3, %c0_24, %c0_25] : memref<9x16x8xbf16, #tpu.memory_space<vmem>>, vector<1x16x8xbf16>
    %22 = vector.shape_cast %21 : vector<1x16x8xbf16> to vector<16x8xbf16>
    %cst_26 = arith.constant dense<0.000000e+00> : vector<16x384xf32>
    %23 = tpu.matmul %22, %20, %cst_26 {dimension_numbers = #tpu.dot_dimension_numbers<[1], [0], [0], [1], [0, 0, 1, 1], [], []>} : vector<16x8xbf16>, vector<8x384xbf16>, vector<16x384xf32> -> vector<16x384xf32>
    %24 = arith.addf %19, %23 : vector<16x384xf32>
    %c0_27 = arith.constant 0 : index
    %c19 = arith.constant 19 : index
    %25 = vector.load %arg7[%c0_27, %c19] : memref<8x768xbf16, #tpu.memory_space<vmem>>, vector<8x384xbf16>
    %c4 = arith.constant 4 : index
    %c0_28 = arith.constant 0 : index
    %c0_29 = arith.constant 0 : index
    %26 = vector.load %arg2[%c4, %c0_28, %c0_29] : memref<9x16x8xbf16, #tpu.memory_space<vmem>>, vector<1x16x8xbf16>
    %27 = vector.shape_cast %26 : vector<1x16x8xbf16> to vector<16x8xbf16>
    %cst_30 = arith.constant dense<0.000000e+00> : vector<16x384xf32>
    %28 = tpu.matmul %27, %25, %cst_30 {dimension_numbers = #tpu.dot_dimension_numbers<[1], [0], [0], [1], [0, 0, 1, 1], [], []>} : vector<16x8xbf16>, vector<8x384xbf16>, vector<16x384xf32> -> vector<16x384xf32>
    %29 = arith.addf %24, %28 : vector<16x384xf32>
    %c0_31 = arith.constant 0 : index
    %c20 = arith.constant 20 : index
    %30 = vector.load %arg7[%c0_31, %c20] : memref<8x768xbf16, #tpu.memory_space<vmem>>, vector<8x384xbf16>
    %c5 = arith.constant 5 : index
    %c0_32 = arith.constant 0 : index
    %c0_33 = arith.constant 0 : index
    %31 = vector.load %arg2[%c5, %c0_32, %c0_33] : memref<9x16x8xbf16, #tpu.memory_space<vmem>>, vector<1x16x8xbf16>
    %32 = vector.shape_cast %31 : vector<1x16x8xbf16> to vector<16x8xbf16>
    %cst_34 = arith.constant dense<0.000000e+00> : vector<16x384xf32>
    %33 = tpu.matmul %32, %30, %cst_34 {dimension_numbers = #tpu.dot_dimension_numbers<[1], [0], [0], [1], [0, 0, 1, 1], [], []>} : vector<16x8xbf16>, vector<8x384xbf16>, vector<16x384xf32> -> vector<16x384xf32>
    %34 = arith.addf %29, %33 : vector<16x384xf32>
    %c0_35 = arith.constant 0 : index
    %c36 = arith.constant 36 : index
    %35 = vector.load %arg7[%c0_35, %c36] : memref<8x768xbf16, #tpu.memory_space<vmem>>, vector<8x384xbf16>
    %c6 = arith.constant 6 : index
    %c0_36 = arith.constant 0 : index
    %c0_37 = arith.constant 0 : index
    %36 = vector.load %arg2[%c6, %c0_36, %c0_37] : memref<9x16x8xbf16, #tpu.memory_space<vmem>>, vector<1x16x8xbf16>
    %37 = vector.shape_cast %36 : vector<1x16x8xbf16> to vector<16x8xbf16>
    %cst_38 = arith.constant dense<0.000000e+00> : vector<16x384xf32>
    %38 = tpu.matmul %37, %35, %cst_38 {dimension_numbers = #tpu.dot_dimension_numbers<[1], [0], [0], [1], [0, 0, 1, 1], [], []>} : vector<16x8xbf16>, vector<8x384xbf16>, vector<16x384xf32> -> vector<16x384xf32>
    %39 = arith.addf %34, %38 : vector<16x384xf32>
    %c0_39 = arith.constant 0 : index
    %c37 = arith.constant 37 : index
    %40 = vector.load %arg7[%c0_39, %c37] : memref<8x768xbf16, #tpu.memory_space<vmem>>, vector<8x384xbf16>
    %c7 = arith.constant 7 : index
    %c0_40 = arith.constant 0 : index
    %c0_41 = arith.constant 0 : index
    %41 = vector.load %arg2[%c7, %c0_40, %c0_41] : memref<9x16x8xbf16, #tpu.memory_space<vmem>>, vector<1x16x8xbf16>
    %42 = vector.shape_cast %41 : vector<1x16x8xbf16> to vector<16x8xbf16>
    %cst_42 = arith.constant dense<0.000000e+00> : vector<16x384xf32>
    %43 = tpu.matmul %42, %40, %cst_42 {dimension_numbers = #tpu.dot_dimension_numbers<[1], [0], [0], [1], [0, 0, 1, 1], [], []>} : vector<16x8xbf16>, vector<8x384xbf16>, vector<16x384xf32> -> vector<16x384xf32>
    %44 = arith.addf %39, %43 : vector<16x384xf32>
    %c0_43 = arith.constant 0 : index
    %c38 = arith.constant 38 : index
    %45 = vector.load %arg7[%c0_43, %c38] : memref<8x768xbf16, #tpu.memory_space<vmem>>, vector<8x384xbf16>
    %c8 = arith.constant 8 : index
    %c0_44 = arith.constant 0 : index
    %c0_45 = arith.constant 0 : index
    %46 = vector.load %arg2[%c8, %c0_44, %c0_45] : memref<9x16x8xbf16, #tpu.memory_space<vmem>>, vector<1x16x8xbf16>
    %47 = vector.shape_cast %46 : vector<1x16x8xbf16> to vector<16x8xbf16>
    %cst_46 = arith.constant dense<0.000000e+00> : vector<16x384xf32>
    %48 = tpu.matmul %47, %45, %cst_46 {dimension_numbers = #tpu.dot_dimension_numbers<[1], [0], [0], [1], [0, 0, 1, 1], [], []>} : vector<16x8xbf16>, vector<8x384xbf16>, vector<16x384xf32> -> vector<16x384xf32>
    %49 = arith.addf %44, %48 : vector<16x384xf32>
    %c0_47 = arith.constant 0 : index
    %c0_48 = arith.constant 0 : index
    %50 = vector.load %arg3[%c0_47, %c0_48] : memref<16x1xf32, #tpu.memory_space<vmem>>, vector<16x1xf32>
    %51 = vector.broadcast %50 : vector<16x1xf32> to vector<16x384xf32>
    %52 = arith.addf %49, %51 : vector<16x384xf32>
    %cst_49 = arith.constant 0.000000e+00 : f32
    %53 = vector.broadcast %cst_49 : f32 to vector<16x384xf32>
    %54 = arith.subf %53, %52 : vector<16x384xf32>
    %55 = math.exp %54 : vector<16x384xf32>
    %cst_50 = arith.constant 1.000000e+00 : f32
    %56 = vector.broadcast %cst_50 : f32 to vector<16x384xf32>
    %57 = arith.addf %56, %55 : vector<16x384xf32>
    %58 = tpu.reciprocal %57 {approx = true} : vector<16x384xf32> -> vector<16x384xf32>
    %59 = arith.mulf %52, %58 : vector<16x384xf32>
    %60 = arith.truncf %59 : vector<16x384xf32> to vector<16x384xbf16>
    %c0_51 = arith.constant 0 : index
    %c0_52 = arith.constant 0 : index
    %c0_53 = arith.constant 0 : index
    %61 = vector.load %arg6[%c0_51, %c0_52, %c0_53] : memref<1x16x384xbf16, #tpu.memory_space<vmem>>, vector<1x16x384xbf16>
    %62 = vector.shape_cast %61 : vector<1x16x384xbf16> to vector<16x384xbf16>
    %63 = vector.shape_cast %60 : vector<16x384xbf16> to vector<1x16x384xbf16>
    tpu.vector_store %arg6[%c0_51, %c0_52, %c0_53], %63 {strides = array<i32>} : memref<1x16x384xbf16, #tpu.memory_space<vmem>>, vector<1x16x384xbf16>,
    return
  }
  func.func @transform_0(%arg0: i32, %arg1: i32) -> (i32, i32, i32) {
    %c0_i32 = arith.constant 0 : i32
    %c0_i32_0 = arith.constant 0 : i32
    %c0_i32_1 = arith.constant 0 : i32
    %c0_i32_2 = arith.constant 0 : i32
    return %c0_i32, %c0_i32_0, %c0_i32_1 : i32, i32, i32
  }
  func.func @transform_1(%arg0: i32, %arg1: i32) -> (i32, i32) {
    %c0_i32 = arith.constant 0 : i32
    %c0_i32_0 = arith.constant 0 : i32
    %c0_i32_1 = arith.constant 0 : i32
    return %c0_i32, %c0_i32_0 : i32, i32
  }
  func.func @transform_2(%arg0: i32, %arg1: i32) -> (i32, i32, i32) {
    %c0_i32 = arith.constant 0 : i32
    %c0_i32_0 = arith.constant 0 : i32
    return %arg0, %c0_i32, %arg1 : i32, i32, i32
  }
  func.func @transform_3(%arg0: i32, %arg1: i32) -> (i32, i32, i32) {
    %c1_i32 = arith.constant 1 : i32
    %0 = arith.addi %arg1, %c1_i32 : i32
    %c0_i32 = arith.constant 0 : i32
    %c0_i32_0 = arith.constant 0 : i32
    return %arg0, %c0_i32, %0 : i32, i32, i32
  }
  func.func @transform_4(%arg0: i32, %arg1: i32) -> (i32, i32, i32) {
    %c0_i32 = arith.constant 0 : i32
    %c0_i32_0 = arith.constant 0 : i32
    return %arg0, %c0_i32, %arg1 : i32, i32, i32
  }
}

</mosaic_0001>

<bundles_post_ra>
// kernel: deep_dbb_forward.1
= control target key start
LH: loop header
LB: loop body
LE: loop exit
PB: predicated region body
PF: predicated region fallthrough
CT: control target
= control target key end

     0   :  { %s1389_s15 = smov 0   ;;  %s1391_s16 = smov 0   ;;  %s1550_s0 = inlined_call_operand.vmem [shape: bf16[9,16,8], index: 0, kind: input, shape index: {}]   ;;  %s1551_s1 = inlined_call_operand.vmem [shape: f32[16,1], index: 1, kind: input, shape index: {}]   ;;  %s1552_s2 = inlined_call_operand.vmem [shape: bf16[2,8,768], index: 2, kind: input, shape index: {}, may-alias: {2,3}]   ;;  %s1553_s3 = inlined_call_operand.vmem [shape: bf16[2,8,768], index: 3, kind: input, shape index: {}, may-alias: {2,3}]   ;;  %s1554_s4 = inlined_call_operand.vmem [shape: bf16[2,16,384], index: 4, kind: output, shape index: {}]  }
   0x1   :  { %s1393_s17 = smov 0  }
   0x2 LB: > { %s26_s18 = sadd.s32 1, %s1349_s16  ;;  %p1173_p0 = scmp.ge.s32.totalorder %s1353_s17, 1  ;;  %s1353_s17 = sphi %s1393_s17, %s14_s17   ;;  %s1349_s16 = sphi %s1391_s16, %s1556_s16   ;;  %s1345_s15 = sphi %s1389_s15, %s1555_s15  }
   0x3   : > { %p28_p1 = scmp.ge.s32.totalorder %s26_s18, 2  ;;  %p204_p2 = scmp.lt.s32.totalorder %s1353_s17, 3 }
   0x5   : > { %s1558_s18 = smov (%p28_p1, %s26_s18), 0  ;;  %p205_p3 = pnand %p1173_p0, %p204_p2 }
   0x6   : > { %p249_p4 = scmp.lt.s32.totalorder (!%p205_p3), %s1345_s15, 1  ;;  %s1355_s27 = smov (!%p205_p3), 127  }
   0x7   : > { %208 = sbr.rel (%p205_p3) target bundleno = 423 (0x1a7), region = 36  ;;  %s1356_s28 = smov (!%p205_p3), 126  }
   0x8   : > { %s1357_s29 = smov (!%p205_p3), 110   ;;  %s1358_s30 = smov (!%p205_p3), 109  }
   0x9   : > { %s1359_s5 = smov (!%p205_p3), 108   ;;  %s1360_s6 = smov (!%p205_p3), 92  }
   0xa   : > { %s1361_s7 = smov (!%p205_p3), 91   ;;  %s1362_s8 = smov (!%p205_p3), 90  }
   0xc   : > { %s1560_s15 = smov (!%p249_p4, %s1345_s15), 1  ;;  %vm328_vm0 = vcmask 1043456   ;;  %v1260_v13 = vld [vmem:[%s1550_s0] sm:$0xff]  ;;  %vm324_vm1 = vcmask 64512   ;;  %vm320_vm2 = vcmask 1039360   ;;  %v1261_v26 = vld [vmem:[%s1550_s0 + $0x8] sm:$0xff] }
   0xd   : > { %s1407_s19 = smul.u32 24, %s1560_s15  ;;  %vm458_vm3 = vcmask 1031168   ;;  %vm538_vm4 = vcmask 900096   ;;  %v1262_v48 = vld [vmem:[%s1550_s0 + $0x10] sm:$0xff]  ;;  %vm698_vm5 = vcmask 883712   ;;  %vm618_vm6 = vcmask 891904  }
   0xe   : > { %v1263_v61 = vld [vmem:[%s1550_s0 + $0x18] sm:$0xff]  ;;  %vm778_vm7 = vcmask 752640   ;;  %vm858_vm8 = vcmask 744448   ;;  %vm938_vm9 = vcmask 736256  }
   0xf   : > { %s256_s22 = scalar_lea.vmem %s1552_s2, %s1407_s19  ;;  %s1259_s23 = sadd.s32 12, %s1407_s19 }
  0x10   : > { %v281_v0 = vld [vmem:[%s256_s22] sm:$0xff]  ;;  %s267_s26 = scalar_lea.vmem %s1553_s3, %s1259_s23  ;;  %v282_v1 = vld [vmem:[%s256_s22 + $0x8] sm:$0xf]  ;;  %s278_s11 = scalar_lea.vmem %s1554_s4, %s1407_s19 }
  0x11   : > { %v304_v2 = vunpack.c.l.b16 %v281_v0  ;;  %v285_v3 = vld [vmem:[%s267_s26] sm:$0xff]  ;;  %284 = vst [vmem:[#allocation2 + $0x8] sm:$0xf] %v282_v1  ;;  %v305_v5 = vunpack.c.h.b16 %v281_v0 }
  0x12   : > { %287 = vst [vmem:[#allocation2 + $0xc] sm:$0xff] %v285_v3 }
  0x13   : > { %v308_v4 = vpack.c.b16 %v304_v2, %v304_v2  ;;  %v309_v6 = vpack.c.b16 %v305_v5, %v305_v5 }
  0x15   : > { %312 = vrot.lane.b32.xlu1 %v308_v4, %s1355_s27  ;;  %450 = vrot.lane.b32.xlu2 %v308_v4, %s1356_s28  ;;  %v392_v12 = vsel %vm328_vm0, %v308_v4, 0  ;;  %v395_v23 = vsel %vm328_vm0, %v309_v6, 0 }
  0x16   : > { %407 = vmatpush.bf16.msra.mxu3 %v392_v12 }
  0x18   : > { %v290_v17 = vld [vmem:[#allocation2 + $0x8] sm:$0xf] }
  0x19   : > { %v293_v7 = vld [vmem:[#allocation2 + $0x8] sm:$0xff]  ;;  %1190 = vmatmul.msk.bf16.vlgmr.msra.gmra.mxu3 %vm324_vm1, %v1260_v13  ;;  %v386_v19 = vunpack.c.l.b16 %v290_v17 }
  0x1a   : > { %v306_v8 = vunpack.c.l.b16 %v293_v7  ;;  %v307_v10 = vunpack.c.h.b16 %v293_v7 }
  0x1b   : > { %v387_v20 = vpack.c.b16 %v386_v19, %v386_v19 }
  0x1c   : > { %v310_v9 = vpack.c.b16 %v306_v8, %v306_v8  ;;  %v311_v11 = vpack.c.b16 %v307_v10, %v307_v10 }
  0x1d   : > { %314 = vrot.lane.b32.xlu1 %v309_v6, %s1355_s27  ;;  %452 = vrot.lane.b32.xlu2 %v309_v6, %s1356_s28  ;;  %v398_v28 = vsel %vm328_vm0, %v387_v20, 0 }
  0x1e   : > { %316 = vrot.lane.b32.xlu0 %v310_v9, %s1355_s27 }
  0x25   : > { %532 = vrot.lane.b32.xlu1 %v309_v6, %s1357_s29  ;;  %534 = vrot.lane.b32.xlu2 %v310_v9, %s1357_s29 }
  0x26   : > { %318 = vrot.lane.b32.xlu0 %v311_v11, %s1355_s27 }
  0x2d   : > { %530 = vrot.lane.b32.xlu1 %v308_v4, %s1357_s29  ;;  %536 = vrot.lane.b32.xlu2 %v311_v11, %s1357_s29 }
  0x2e   : > { %454 = vrot.lane.b32.xlu0 %v310_v9, %s1356_s28 }
  0x35   : > { %616 = vrot.lane.b32.xlu1 %v311_v11, %s1358_s30  ;;  %610 = vrot.lane.b32.xlu2 %v308_v4, %s1358_s30 }
  0x36   : > { %456 = vrot.lane.b32.xlu0 %v311_v11, %s1356_s28 }
  0x3d   : > { %690 = vrot.lane.b32.xlu1 %v308_v4, %s1359_s5  ;;  %692 = vrot.lane.b32.xlu2 %v309_v6, %s1359_s5 }
  0x3e   : > { %614 = vrot.lane.b32.xlu0 %v310_v9, %s1358_s30 }
  0x45   : > { %772 = vrot.lane.b32.xlu1 %v309_v6, %s1360_s6  ;;  %694 = vrot.lane.b32.xlu2 %v310_v9, %s1359_s5 }
  0x46   : > { %612 = vrot.lane.b32.xlu0 %v309_v6, %s1358_s30 }
  0x4d   : > { %774 = vrot.lane.b32.xlu1 %v310_v9, %s1360_s6  ;;  %852 = vrot.lane.b32.xlu2 %v309_v6, %s1361_s7 }
  0x4e   : > { %770 = vrot.lane.b32.xlu0 %v308_v4, %s1360_s6 }
  0x55   : > { %776 = vrot.lane.b32.xlu1 %v311_v11, %s1360_s6  ;;  %850 = vrot.lane.b32.xlu2 %v308_v4, %s1361_s7 }
  0x56   : > { %696 = vrot.lane.b32.xlu0 %v311_v11, %s1359_s5 }
  0x5d   : > { %934 = vrot.lane.b32.xlu1 %v310_v9, %s1362_s8  ;;  %936 = vrot.lane.b32.xlu2 %v311_v11, %s1362_s8 }
  0x5e   : > { %854 = vrot.lane.b32.xlu0 %v310_v9, %s1361_s7 }
  0x65   : > { %932 = vrot.lane.b32.xlu1 %v309_v6, %s1362_s8 }
  0x66   : > { %856 = vrot.lane.b32.xlu0 %v311_v11, %s1361_s7  ;;  %v1264_v11 = vld [vmem:[%s1550_s0 + $0x20] sm:$0xff] }
  0x6e   : > { %930 = vrot.lane.b32.xlu0 %v308_v4, %s1362_s8 }
  0x6f   : > { %v451_v14 = vpop.permute.xlu2 %450 }
  0x77   : > { %v453_v15 = vpop.permute.xlu2 %452 }
  0x78   : > { %v459_v31 = vsel %vm458_vm3, %v451_v14, %v453_v15  ;;  %v1265_v14 = vld [vmem:[%s1550_s0 + $0x28] sm:$0xff] }
  0x79   : > { %v466_v35 = vsel %vm328_vm0, %v459_v31, 0 }
  0x7f   : > { %v535_v18 = vpop.permute.xlu2 %534 }
  0x87   : > { %v313_v16 = vpop.permute.xlu1 %312  ;;  %v537_v30 = vpop.permute.xlu2 %536 }
  0x88   : > { %v541_v41 = vsel %vm538_vm4, %v535_v18, %v537_v30 }
  0x89   : > { %v552_v46 = vsel %vm328_vm0, %v541_v41, 0 }
  0x8f   : > { %v315_v21 = vpop.permute.xlu1 %314  ;;  %v611_v39 = vpop.permute.xlu2 %610 }
  0x90   : > { %v321_v22 = vsel %vm320_vm2, %v313_v16, %v315_v21  ;;  %v317_v24 = vpop.permute.xlu0 %316 }
  0x91   : > { %v330_v25 = vsel %vm328_vm0, %v321_v22, 0  ;;  %v322_v27 = vsel %vm320_vm2, %v315_v21, %v317_v24 }
  0x92   : > { %345 = vmatpush.bf16.msra.mxu0 %v330_v25  ;;  %v333_v29 = vsel %vm328_vm0, %v322_v27, 0 }
  0x93   : > { %359 = vmatpush.bf16.msra.mxu1 %v333_v29 }
  0x95   : > { %1183 = vmatmul.msk.bf16.vlgmr.msra.gmra.mxu0 %vm324_vm1, %v1261_v26 }
  0x96   : > { %421 = vmatpush.bf16.msrb.mxu0 %v395_v23  ;;  %1184 = vmatmul.msk.bf16.vlgmr.msra.gmra.mxu1 %vm324_vm1, %v1261_v26 }
  0x97   : > { %435 = vmatpush.bf16.msrb.mxu1 %v398_v28  ;;  %v533_v32 = vpop.permute.xlu1 %532  ;;  %v693_v50 = vpop.permute.xlu2 %692  ;;  %v1266_v28 = vld [vmem:[%s1550_s0 + $0x30] sm:$0xff] }
  0x98   : > { %v319_v33 = vpop.permute.xlu0 %318  ;;  %v540_v36 = vsel %vm538_vm4, %v533_v32, %v535_v18 }
  0x99   : > { %v323_v34 = vsel %vm320_vm2, %v317_v24, %v319_v33  ;;  %v549_v38 = vsel %vm328_vm0, %v540_v36, 0 }
  0x9a   : > { %v336_v37 = vsel %vm328_vm0, %v323_v34, 0 }
  0x9b   : > { %373 = vmatpush.bf16.msra.mxu2 %v336_v37 }
  0x9e   : > { %1185 = vmatmul.msk.bf16.vlgmr.msra.gmra.mxu2 %vm324_vm1, %v1261_v26 }
  0x9f   : > { %481 = vmatpush.bf16.msrb.mxu2 %v466_v35  ;;  %v531_v40 = vpop.permute.xlu1 %530  ;;  %v695_v56 = vpop.permute.xlu2 %694 }
  0xa0   : > { %v539_v42 = vsel %vm538_vm4, %v531_v40, %v533_v32  ;;  %v455_v43 = vpop.permute.xlu0 %454  ;;  %v700_v63 = vsel %vm698_vm5, %v693_v50, %v695_v56 }
  0xa1   : > { %v546_v44 = vsel %vm328_vm0, %v539_v42, 0  ;;  %v460_v45 = vsel %vm458_vm3, %v453_v15, %v455_v43  ;;  %v709_v3 = vsel %vm328_vm0, %v700_v63, 0  ;;  %v1267_v42 = vld [vmem:[%s1550_s0 + $0x38] sm:$0xff] }
  0xa2   : > { %561 = vmatpush.bf16.msra.mxu1 %v546_v44  ;;  %v469_v47 = vsel %vm328_vm0, %v460_v45, 0  ;;  %v1268_v44 = vld [vmem:[%s1550_s0 + $0x40] sm:$0xff] }
  0xa3   : > { %575 = vmatpush.bf16.msra.mxu2 %v549_v38  ;;  %495 = vmatpush.bf16.msrb.mxu3 %v469_v47  ;;  %v1003_v38 = vld [vmem:[%s1551_s1 + $0x8] sm:$0xff]  ;;  %v1002_v45 = vld [vmem:[%s1551_s1] sm:$0xff] }
  0xa5   : > { %1191 = vmatmul.msk.bf16.vlgmr.msrb.gmra.mxu0 %vm324_vm1, %v1260_v13 }
  0xa6   : > { %1200 = vmatmul.msk.bf16.vlgmr.msrb.gmra.mxu3 %vm324_vm1, %v1262_v48  ;;  %1192 = vmatmul.msk.bf16.vlgmr.msrb.gmra.mxu1 %vm324_vm1, %v1260_v13 }
  0xa7   : > { %589 = vmatpush.bf16.msra.mxu3 %v552_v46  ;;  %v617_v49 = vpop.permute.xlu1 %616  ;;  %v853_v4 = vpop.permute.xlu2 %852 }
  0xa8   : > { %v457_v51 = vpop.permute.xlu0 %456 }
  0xa9   : > { %v461_v52 = vsel %vm458_vm3, %v455_v43, %v457_v51 }
  0xaa   : > { %v472_v53 = vsel %vm328_vm0, %v461_v52, 0 }
  0xab   : > { %509 = vmatpush.bf16.msra.mxu0 %v472_v53 }
  0xae   : > { %1199 = vmatmul.msk.bf16.vlgmr.msrb.gmra.mxu2 %vm324_vm1, %v1262_v48 }
  0xaf   : > { %v691_v54 = vpop.permute.xlu1 %690  ;;  %v851_v15 = vpop.permute.xlu2 %850 }
  0xb0   : > { %v699_v55 = vsel %vm698_vm5, %v691_v54, %v693_v50  ;;  %v615_v57 = vpop.permute.xlu0 %614  ;;  %v859_v16 = vsel %vm858_vm8, %v851_v15, %v853_v4 }
  0xb1   : > { %v706_v58 = vsel %vm328_vm0, %v699_v55, 0  ;;  %v621_v59 = vsel %vm618_vm6, %v615_v57, %v617_v49  ;;  %v866_v22 = vsel %vm328_vm0, %v859_v16, 0 }
  0xb2   : > { %721 = vmatpush.bf16.msrb.mxu3 %v706_v58  ;;  %v632_v60 = vsel %vm328_vm0, %v621_v59, 0 }
  0xb3   : > { %669 = vmatpush.bf16.msrb.mxu2 %v632_v60 }
  0xb5   : > { %1201 = vmatmul.msk.bf16.vlgmr.msra.gmra.mxu0 %vm324_vm1, %v1262_v48  ;;  %v409_v48 = vpop.f32.mrf.mxu3 }
  0xb6   : > { %1210 = vmatmul.msk.bf16.vlgmr.msra.gmra.mxu3 %vm324_vm1, %v1263_v61  ;;  %1208 = vmatmul.msk.bf16.vlgmr.msra.gmra.mxu1 %vm324_vm1, %v1263_v61 }
  0xb7   : > { %v773_v62 = vpop.permute.xlu1 %772  ;;  %v937_v29 = vpop.permute.xlu2 %936 }
  0xb8   : > { %v613_v0 = vpop.permute.xlu0 %612 }
  0xb9   : > { %v620_v1 = vsel %vm618_vm6, %v613_v0, %v615_v57  ;;  %v619_v2 = vsel %vm618_vm6, %v611_v39, %v613_v0  ;;  %v1363_v39 = vmov 0  }
  0xba   : > { %v629_v5 = vsel %vm328_vm0, %v620_v1, 0  ;;  %v626_v6 = vsel %vm328_vm0, %v619_v2, 0  ;;  %1306 = vset.pattern.permute.xlu0 %v1363_v39  ;;  %1305 = vset.pattern.permute.xlu2 %v1363_v39 }
  0xbb   : > { %655 = vmatpush.bf16.msrb.mxu1 %v629_v5  ;;  %641 = vmatpush.bf16.msrb.mxu0 %v626_v6 }
  0xbc   : > { %1011 = vperm.xlu0 %1306, %v1003_v38   ;;  %1006 = vperm.xlu2 %1305, %v1002_v45  }
  0xbd   : > { %v411_v51 = vpop.f32.mrf.mxu3 }
  0xbe   : > { %1209 = vmatmul.msk.bf16.vlgmr.msra.gmra.mxu2 %vm324_vm1, %v1263_v61 }
  0xbf   : > { %735 = vmatpush.bf16.msra.mxu0 %v709_v3  ;;  %v775_v7 = vpop.permute.xlu1 %774 }
  0xc0   : > { %v780_v8 = vsel %vm778_vm7, %v773_v62, %v775_v7  ;;  %v771_v9 = vpop.permute.xlu0 %770 }
  0xc1   : > { %v789_v10 = vsel %vm328_vm0, %v780_v8, 0  ;;  %v779_v12 = vsel %vm778_vm7, %v771_v9, %v773_v62 }
  0xc2   : > { %815 = vmatpush.bf16.msra.mxu3 %v789_v10  ;;  %v786_v13 = vsel %vm328_vm0, %v779_v12, 0 }
  0xc3   : > { %801 = vmatpush.bf16.msra.mxu2 %v786_v13 }
  0xc5   : > { %1217 = vmatmul.msk.bf16.vlgmr.msrb.gmra.mxu0 %vm324_vm1, %v1264_v11 }
  0xc6   : > { %1226 = vmatmul.msk.bf16.vlgmr.msrb.gmra.mxu3 %vm324_vm1, %v1265_v14  ;;  %1218 = vmatmul.msk.bf16.vlgmr.msrb.gmra.mxu1 %vm324_vm1, %v1264_v11 }
  0xc7   : > { %v777_v17 = vpop.permute.xlu1 %776 }
  0xc8   : > { %v781_v18 = vsel %vm778_vm7, %v775_v7, %v777_v17  ;;  %v697_v19 = vpop.permute.xlu0 %696 }
  0xc9   : > { %v792_v20 = vsel %vm328_vm0, %v781_v18, 0  ;;  %v701_v21 = vsel %vm698_vm5, %v695_v56, %v697_v19 }
  0xca   : > { %829 = vmatpush.bf16.msrb.mxu0 %v792_v20  ;;  %v712_v23 = vsel %vm328_vm0, %v701_v21, 0 }
  0xcb   : > { %749 = vmatpush.bf16.msra.mxu1 %v712_v23 }
  0xce   : > { %1219 = vmatmul.msk.bf16.vlgmr.msrb.gmra.mxu2 %vm324_vm1, %v1264_v11 }
  0xcf   : > { %881 = vmatpush.bf16.msrb.mxu1 %v866_v22  ;;  %v935_v24 = vpop.permute.xlu1 %934 }
  0xd0   : > { %v855_v25 = vpop.permute.xlu0 %854  ;;  %v941_v35 = vsel %vm938_vm9, %v935_v24, %v937_v29 }
  0xd1   : > { %v860_v26 = vsel %vm858_vm8, %v853_v4, %v855_v25  ;;  %v952_v37 = vsel %vm328_vm0, %v941_v35, 0 }
  0xd2   : > { %v869_v27 = vsel %vm328_vm0, %v860_v26, 0 }
  0xd3   : > { %895 = vmatpush.bf16.msrb.mxu2 %v869_v27 }
  0xd5   : > { %1227 = vmatmul.msk.bf16.vlgmr.msra.gmra.mxu0 %vm324_vm1, %v1265_v14 }
  0xd6   : > { %1236 = vmatmul.msk.bf16.vlgmr.msra.gmra.mxu3 %vm324_vm1, %v1266_v28  ;;  %1228 = vmatmul.msk.bf16.vlgmr.msra.gmra.mxu1 %vm324_vm1, %v1265_v14 }
  0xd7   : > { %v933_v30 = vpop.permute.xlu1 %932 }
  0xd8   : > { %v940_v31 = vsel %vm938_vm9, %v933_v30, %v935_v24  ;;  %v857_v32 = vpop.permute.xlu0 %856 }
  0xd9   : > { %v949_v33 = vsel %vm328_vm0, %v940_v31, 0  ;;  %v861_v34 = vsel %vm858_vm8, %v855_v25, %v857_v32 }
  0xda   : > { %975 = vmatpush.bf16.msra.mxu1 %v949_v33  ;;  %v872_v36 = vsel %vm328_vm0, %v861_v34, 0 }
  0xdb   : > { %909 = vmatpush.bf16.msrb.mxu3 %v872_v36 }
  0xde   : > { %1235 = vmatmul.msk.bf16.vlgmr.msra.gmra.mxu2 %vm324_vm1, %v1266_v28 }
  0xdf   : > { %989 = vmatpush.bf16.msra.mxu2 %v952_v37 }
  0xe0   : > { %v931_v40 = vpop.permute.xlu0 %930 }
  0xe1   : > { %v939_v41 = vsel %vm938_vm9, %v931_v40, %v933_v30 }
  0xe2   : > { %v946_v43 = vsel %vm328_vm0, %v939_v41, 0 }
  0xe3   : > { %961 = vmatpush.bf16.msra.mxu0 %v946_v43 }
  0xe5   : > { %1237 = vmatmul.msk.bf16.vlgmr.msrb.gmra.mxu0 %vm324_vm1, %v1266_v28 }
  0xe6   : > { %1246 = vmatmul.msk.bf16.vlgmr.msrb.gmra.mxu3 %vm324_vm1, %v1267_v42  ;;  %1244 = vmatmul.msk.bf16.vlgmr.msrb.gmra.mxu1 %vm324_vm1, %v1267_v42 }
  0xee   : > { %1245 = vmatmul.msk.bf16.vlgmr.msrb.gmra.mxu2 %vm324_vm1, %v1267_v42 }
  0xf5   : > { %1253 = vmatmul.msk.bf16.vlgmr.msra.gmra.mxu0 %vm324_vm1, %v1268_v44 }
  0xf6   : > { %1254 = vmatmul.msk.bf16.vlgmr.msra.gmra.mxu1 %vm324_vm1, %v1268_v44 }
  0xfe   : > { %1255 = vmatmul.msk.bf16.vlgmr.msra.gmra.mxu2 %vm324_vm1, %v1268_v44 }
 0x112   : > { %v347_v46 = vpop.f32.mrf.mxu0 }
 0x113   : > { %v361_v47 = vpop.f32.mrf.mxu1  ;;  %v410_v24 = vadd.f32 %v409_v48, %v347_v46 }
 0x11a   : > { %v349_v49 = vpop.f32.mrf.mxu0 }
 0x11b   : > { %v363_v50 = vpop.f32.mrf.mxu1  ;;  %v412_v33 = vadd.f32 %v411_v51, %v349_v49  ;;  %v1007_v51 = vpop.permute.xlu2 %1006 }
 0x121   : > { %v375_v52 = vpop.f32.mrf.mxu2 }
 0x122   : > { %v423_v53 = vpop.f32.mrf.mxu0 }
 0x123   : > { %v424_v54 = vadd.f32 %v423_v53, %v361_v47  ;;  %v437_v55 = vpop.f32.mrf.mxu1 }
 0x124   : > { %v438_v56 = vadd.f32 %v437_v55, %v375_v52 }
 0x129   : > { %v377_v57 = vpop.f32.mrf.mxu2  ;;  %v497_v59 = vpop.f32.mrf.mxu3 }
 0x12a   : > { %v425_v58 = vpop.f32.mrf.mxu0  ;;  %v517_v29 = vadd.f32 %v497_v59, %v424_v54 }
 0x12b   : > { %v426_v60 = vadd.f32 %v425_v58, %v363_v50  ;;  %v439_v61 = vpop.f32.mrf.mxu1 }
 0x12c   : > { %v440_v62 = vadd.f32 %v439_v61, %v377_v57 }
 0x131   : > { %v483_v63 = vpop.f32.mrf.mxu2  ;;  %v499_v3 = vpop.f32.mrf.mxu3 }
 0x132   : > { %v511_v0 = vpop.f32.mrf.mxu0  ;;  %v516_v27 = vadd.f32 %v483_v63, %v410_v24  ;;  %v520_v42 = vadd.f32 %v499_v3, %v426_v60 }
 0x133   : > { %v518_v1 = vadd.f32 %v511_v0, %v438_v56  ;;  %v563_v2 = vpop.f32.mrf.mxu1 }
 0x134   : > { %v596_v30 = vadd.f32 %v563_v2, %v516_v27 }
 0x139   : > { %v485_v4 = vpop.f32.mrf.mxu2  ;;  %v591_v8 = vpop.f32.mrf.mxu3 }
 0x13a   : > { %v513_v5 = vpop.f32.mrf.mxu0  ;;  %v519_v37 = vadd.f32 %v485_v4, %v412_v33 }
 0x13b   : > { %v1522_v6 = vadd.f32 %v513_v5, %v440_v62  ;;  %v565_v7 = vpop.f32.mrf.mxu1  ;;  %v598_v62 = vadd.f32 %v591_v8, %v518_v1 }
 0x13c   : > { %v599_v44 = vadd.f32 %v565_v7, %v519_v37 }
 0x141   : > { %v577_v9 = vpop.f32.mrf.mxu2  ;;  %v1524_v12 = vpop.f32.mrf.mxu3 }
 0x142   : > { %v643_v10 = vpop.f32.mrf.mxu0  ;;  %v597_v32 = vadd.f32 %v577_v9, %v517_v29 }
 0x143   : > { %v657_v11 = vpop.f32.mrf.mxu1  ;;  %v676_v34 = vadd.f32 %v643_v10, %v596_v30 }
 0x144   : > { %v677_v40 = vadd.f32 %v657_v11, %v597_v32 }
 0x149   : > { %v579_v13 = vpop.f32.mrf.mxu2  ;;  %v723_v18 = vpop.f32.mrf.mxu3 }
 0x14a   : > { %v645_v14 = vpop.f32.mrf.mxu0  ;;  %v756_v38 = vadd.f32 %v723_v18, %v676_v34  ;;  %v600_v45 = vadd.f32 %v579_v13, %v520_v42 }
 0x14b   : > { %v659_v15 = vpop.f32.mrf.mxu1  ;;  %v679_v47 = vadd.f32 %v645_v14, %v599_v44  ;;  %v1012_v14 = vpop.permute.xlu0 %1011 }
 0x14c   : > { %v680_v57 = vadd.f32 %v659_v15, %v600_v45 }
 0x151   : > { %v671_v16 = vpop.f32.mrf.mxu2  ;;  %v725_v23 = vpop.f32.mrf.mxu3 }
 0x152   : > { %v737_v17 = vpop.f32.mrf.mxu0  ;;  %v759_v54 = vadd.f32 %v725_v23, %v679_v47  ;;  %v678_v2 = vadd.f32 %v671_v16, %v598_v62  ;;  %v601_v16 = vadd.f32 %v1524_v12, %v1522_v6 }
 0x153   : > { %v751_v19 = vpop.f32.mrf.mxu1  ;;  %v757_v43 = vadd.f32 %v737_v17, %v677_v40 }
 0x154   : > { %v758_v23 = vadd.f32 %v751_v19, %v678_v2 }
 0x159   : > { %v1526_v20 = vpop.f32.mrf.mxu2  ;;  %v817_v31 = vpop.f32.mrf.mxu3 }
 0x15a   : > { %v739_v21 = vpop.f32.mrf.mxu0  ;;  %v837_v46 = vadd.f32 %v817_v31, %v757_v43  ;;  %v681_v27 = vadd.f32 %v1526_v20, %v601_v16 }
 0x15b   : > { %v1528_v22 = vpop.f32.mrf.mxu1  ;;  %v760_v60 = vadd.f32 %v739_v21, %v680_v57 }
 0x161   : > { %v803_v25 = vpop.f32.mrf.mxu2  ;;  %v819_v48 = vpop.f32.mrf.mxu3 }
 0x162   : > { %v831_v26 = vpop.f32.mrf.mxu0  ;;  %v836_v41 = vadd.f32 %v803_v25, %v756_v38  ;;  %v840_v3 = vadd.f32 %v819_v48, %v760_v60  ;;  %v761_v38 = vadd.f32 %v1528_v22, %v681_v27 }
 0x163   : > { %v883_v28 = vpop.f32.mrf.mxu1  ;;  %v838_v21 = vadd.f32 %v831_v26, %v758_v23 }
 0x164   : > { %v916_v50 = vadd.f32 %v883_v28, %v836_v41 }
 0x169   : > { %v805_v35 = vpop.f32.mrf.mxu2  ;;  %v911_v17 = vpop.f32.mrf.mxu3 }
 0x16a   : > { %v1530_v36 = vpop.f32.mrf.mxu0  ;;  %v839_v59 = vadd.f32 %v805_v35, %v759_v54  ;;  %v918_v28 = vadd.f32 %v911_v17, %v838_v21 }
 0x16b   : > { %v885_v39 = vpop.f32.mrf.mxu1  ;;  %v841_v26 = vadd.f32 %v1530_v36, %v761_v38 }
 0x16c   : > { %v919_v5 = vadd.f32 %v885_v39, %v839_v59 }
 0x171   : > { %v897_v52 = vpop.f32.mrf.mxu2  ;;  %v913_v12 = vpop.f32.mrf.mxu3 }
 0x172   : > { %v917_v53 = vadd.f32 %v897_v52, %v837_v46  ;;  %v963_v49 = vpop.f32.mrf.mxu0  ;;  %v921_v39 = vadd.f32 %v913_v12, %v841_v26 }
 0x173   : > { %v996_v55 = vadd.f32 %v963_v49, %v916_v50  ;;  %v977_v56 = vpop.f32.mrf.mxu1 }
 0x174   : > { %v997_v58 = vadd.f32 %v977_v56, %v917_v53 }
 0x175   : > { %v1014_v61 = vadd.f32 %v1007_v51, %v996_v55 }
 0x176   : > { %v1015_v63 = vadd.f32 %v1007_v51, %v997_v58 }
 0x177   : > { %v1020_v0 = vsub.f32 0.0, %v1014_v61 }
 0x178   : > { %v1021_v4 = vsub.f32 0.0, %v1015_v63 }
 0x179   : > { %v899_v7 = vpop.f32.mrf.mxu2  ;;  %v1026_v9 = vmul.f32 1.442695, %v1020_v0 }
 0x17a   : > { %v920_v10 = vadd.f32 %v899_v7, %v840_v3  ;;  %v1028_v11 = vmul.f32 1.442695, %v1021_v4  ;;  %v965_v13 = vpop.f32.mrf.mxu0 }
 0x17b   : > { %1307 = vpow2.f32 %v1026_v9  ;;  %v999_v15 = vadd.f32 %v965_v13, %v919_v5  ;;  %v979_v18 = vpop.f32.mrf.mxu1 }
 0x17c   : > { %1309 = vpow2.f32 %v1028_v11  ;;  %v1000_v1 = vadd.f32 %v979_v18, %v920_v10 }
 0x17d   : > { %v1017_v8 = vadd.f32 %v1012_v14, %v999_v15 }
 0x17e   : > { %v1018_v24 = vadd.f32 %v1012_v14, %v1000_v1 }
 0x17f   : > { %v1023_v25 = vsub.f32 0.0, %v1017_v8 }
 0x180   : > { %v1024_v29 = vsub.f32 0.0, %v1018_v24 }
 0x181   : > { %v1308_v30 = vpop.eup %1307  ;;  %v991_v31 = vpop.f32.mrf.mxu2  ;;  %v1032_v32 = vmul.f32 1.442695, %v1023_v25 }
 0x182   : > { %v1310_v33 = vpop.eup %1309  ;;  %v1038_v34 = vadd.f32 1.0, %v1308_v30  ;;  %v998_v35 = vadd.f32 %v991_v31, %v918_v28  ;;  %v1034_v19 = vmul.f32 1.442695, %v1024_v29 }
 0x183   : > { %v1039_v37 = vadd.f32 1.0, %v1310_v33  ;;  %1311 = vpow2.f32 %v1032_v32 }
 0x184   : > { %1313 = vrcp.f32 %v1038_v34  ;;  %v1016_v6 = vadd.f32 %v1007_v51, %v998_v35 }
 0x185   : > { %1315 = vrcp.f32 %v1039_v37 }
 0x186   : > { %v1022_v20 = vsub.f32 0.0, %v1016_v6  ;;  %1317 = vpow2.f32 %v1034_v19 }
 0x188   : > { %v1030_v40 = vmul.f32 1.442695, %v1022_v20 }
 0x189   : > { %v1312_v41 = vpop.eup %1311  ;;  %v993_v42 = vpop.f32.mrf.mxu2 }
 0x18a   : > { %v1314_v43 = vpop.eup %1313  ;;  %1319 = vpow2.f32 %v1030_v40  ;;  %v1041_v44 = vadd.f32 1.0, %v1312_v41  ;;  %v1001_v45 = vadd.f32 %v993_v42, %v921_v39 }
 0x18b   : > { %v1316_v46 = vpop.eup %1315  ;;  %v1050_v47 = vmul.f32 %v1314_v43, %v1014_v61 }
 0x18c   : > { %v1318_v22 = vpop.eup %1317  ;;  %v1051_v48 = vmul.f32 %v1316_v46, %v1015_v63  ;;  %1321 = vrcp.f32 %v1041_v44  ;;  %v1019_v50 = vadd.f32 %v1012_v14, %v1001_v45 }
 0x18d   : > { %v1042_v36 = vadd.f32 1.0, %v1318_v22 }
 0x18e   : > { %v1056_v52 = vpack.c.bf16 %v1051_v48, %v1050_v47  ;;  %v1025_v53 = vsub.f32 0.0, %v1019_v50 }
 0x18f   : > { %1323 = vrcp.f32 %v1042_v36 }
 0x190   : > { %v1320_v49 = vpop.eup %1319  ;;  %1060 = vst [vmem:[%s278_s11] sm:$0xff] %v1056_v52  ;;  %v1036_v51 = vmul.f32 1.442695, %v1025_v53 }
 0x191   : > { %v1040_v54 = vadd.f32 1.0, %v1320_v49 }
 0x192   : > { %v1322_v55 = vpop.eup %1321  ;;  %1325 = vpow2.f32 %v1036_v51 }
 0x193   : > { %1327 = vrcp.f32 %v1040_v54  ;;  %v1053_v56 = vmul.f32 %v1322_v55, %v1017_v8 }
 0x195   : > { %v1324_v57 = vpop.eup %1323 }
 0x196   : > { %v1054_v58 = vmul.f32 %v1324_v57, %v1018_v24 }
 0x198   : > { %v1326_v59 = vpop.eup %1325  ;;  %v1058_v61 = vpack.c.bf16 %v1054_v58, %v1053_v56 }
 0x199   : > { %v1328_v62 = vpop.eup %1327  ;;  %v1043_v60 = vadd.f32 1.0, %v1326_v59 }
 0x19a   : > { %v1052_v63 = vmul.f32 %v1328_v62, %v1016_v6  ;;  %1062 = vst [vmem:[%s278_s11 + $0xc] sm:$0xff] %v1058_v61 }
 0x19b   : > { %1329 = vrcp.f32 %v1043_v60 }
 0x19c   : > { %v1057_v0 = vpack.c.bf16 %v1052_v63, %v1052_v63 }
 0x19e   : > { %1061 = vst [vmem:[%s278_s11 + $0x8] sm:$0xf] %v1057_v0 }
 0x1a1   : > { %v1330_v2 = vpop.eup %1329 }
 0x1a2   : > { %v1055_v3 = vmul.f32 %v1330_v2, %v1019_v50 }
 0x1a4   : > { %v1059_v4 = vpack.c.bf16 %v1055_v3, %v1055_v3 }
 0x1a6   : > { %1063 = vst [vmem:[%s278_s11 + $0x14] sm:$0xf] %v1059_v4 }
 0x1a7 PF: > { %s14_s17 = sadd.s32 1, %s1353_s17   ;;  %s1555_s15 = smov %s1349_s16 }
 0x1a8   : > { %p11_p5 = scmp.ge.s32.totalorder %s14_s17, 4   ;;  %s1556_s16 = smov %s1558_s18 }
 0x1aa   :  { %13 = sbr.rel (!%p11_p5) target bundleno = 2 (0x2), region = 77 }

</bundles_post_ra>
